<compile_context>
chip_gen: v5e
topology: v5e:2x2
jax: 0.10.0
libtpu: 0.0.40
codegen_flags: <defaults>
</compile_context>

<pallas_src>
import jax
import jax.numpy as jnp
from jax import lax
from jax.experimental import pallas as pl
from jax.experimental.pallas import tpu as pltpu


def _round_up(x, m):
    return (x + m - 1) // m * m


# ----------------------------- Pallas kernel ------------------------------ #
def tabular_mlp_kernel(x_ref, w1_ref, b1_ref, w2_ref, b2_ref, wf_ref, bf_ref,
                       out_ref):
    """Fused MLP with all BN folded into weights.

    Layer 1 (bn_cont + concat + BN1 + Linear + ReLU): h = relu(x @ W1 + b1)
    Layer 2 (BN2 + Linear + ReLU):                    h = relu(h @ W2 + b2)
    Final  (Linear + bias):                           out = h @ Wf + bf
    Accumulation is f32; activations/weights are bf16 (or f32).
    """
    h = jnp.dot(x_ref[...], w1_ref[...],
                preferred_element_type=jnp.float32) + b1_ref[...]
    h = jnp.maximum(h, 0.0).astype(w2_ref.dtype)

    h = jnp.dot(h, w2_ref[...],
                preferred_element_type=jnp.float32) + b2_ref[...]
    h = jnp.maximum(h, 0.0).astype(wf_ref.dtype)

    out_ref[...] = (jnp.dot(h, wf_ref[...],
                            preferred_element_type=jnp.float32)
                    + bf_ref[...]).astype(out_ref.dtype)


# ------------------------------ wrapper ------------------------------------ #
def run_tabular_mlp(x, folded, *, block_b=8192):
    """Run the fused tabular MLP over a batch grid.

    x:      (B, n_emb + n_cont) concatenated [embedding outputs, raw x_cont]
            (bn_cont / BN1 / BN2 are folded into the weights)
    folded: dict from fold_model_params()
    """
    B, d_in = x.shape
    out_sz = folded["wf"].shape[1]
    cdt = folded["w1"].dtype
    x = x.astype(cdt)

    # Batch tile: multiple of 8 sublanes, capped by block_b; keep >= 2 grid
    # steps for large batches (megacore on v7x), then pad batch to the tile.
    tb = min(block_b, _round_up(B, 8))
    if B > 8:
        tb = min(tb, _round_up(pl.cdiv(B, 2), 8))
    b_pad = _round_up(B, tb)
    if b_pad != B:
        x = jnp.pad(x, ((0, b_pad - B), (0, 0)))

    # VMEM budget from the lane-padded, double-buffered batch blocks.
    isz = jnp.dtype(cdt).itemsize
    blk_bytes = lambda cols: tb * _round_up(max(cols, 1), 128) * isz
    est = 2 * (blk_bytes(d_in) + tb * _round_up(out_sz, 128) * 4)
    vmem_limit = min(64 << 20, max(32 << 20, 2 * est + (4 << 20)))

    def const_spec(arr):
        # Full-array block, constant index -> stays resident in VMEM.
        return pl.BlockSpec(arr.shape, lambda i: (0, 0))

    out = pl.pallas_call(
        tabular_mlp_kernel,
        out_shape=jax.ShapeDtypeStruct((b_pad, out_sz), jnp.float32),
        grid=(b_pad // tb,),
        in_specs=[
            pl.BlockSpec((tb, d_in), lambda i: (i, 0)),
            const_spec(folded["w1"]),
            const_spec(folded["b1"]),
            const_spec(folded["w2"]),
            const_spec(folded["b2"]),
            const_spec(folded["wf"]),
            const_spec(folded["bf"]),
        ],
        # Output block last dim == full array dim: no 128-lane padding, no
        # post-kernel slice on the lane axis.
        out_specs=pl.BlockSpec((tb, out_sz), lambda i: (i, 0)),
        compiler_params=pltpu.CompilerParams(
            dimension_semantics=("parallel",),
            vmem_limit_bytes=int(vmem_limit)),
    )(x, folded["w1"], folded["b1"], folded["w2"], folded["b2"],
      folded["wf"], folded["bf"])

    return out[:B]


# ------------------------------ helpers ----------------------------------- #
def fold_bn(gamma, beta, running_mean, running_var, eps=1e-5):
    """Eval-mode BatchNorm1d folded to y = x*scale + shift."""
    scale = gamma / jnp.sqrt(running_var + eps)
    shift = beta - running_mean * scale
    return scale, shift


def fold_model_params(params, eps=1e-5, compute_dtype=jnp.bfloat16):
    """Fold bn_cont / bn1 / bn2 into the Linear weights (fold math in f32),
    then cast weights to compute_dtype. Biases stay f32 (added to f32 acc)."""
    prec = lax.Precision.HIGHEST
    n_emb = sum(t.shape[1] for t in params["emb_tables"])

    s1, t1 = fold_bn(*params["bn1"], eps=eps)
    s2, t2 = fold_bn(*params["bn2"], eps=eps)
    sc, tc = fold_bn(*params["bn_cont"], eps=eps)

    # Layer 1: relu(BN1([x_emb, bn_cont(x_cont)]) @ W1.T)
    #   kernel sees raw [x_emb, x_cont]; both BNs folded into W1/b1.
    w1_t = params["w1"].T                         # (d_in, H1)
    w1_eff = s1[:, None] * w1_t                   # BN1 scale folded in
    w1a = w1_eff[:n_emb]                          # embedding slice
    w1b_raw = w1_eff[n_emb:]                      # continuous slice (BN1 only)
    w1b = sc[:, None] * w1b_raw                   # bn_cont scale folded in
    w1 = jnp.concatenate([w1a, w1b], axis=0)      # (d_in, H1), single dot
    b1 = (jnp.dot(t1, w1_t, precision=prec)
          + jnp.dot(tc, w1b_raw, precision=prec))  # BN1 + bn_cont shifts

    # Layer 2: relu(BN2(h) @ W2.T)
    w2_t = params["w2"].T                         # (H1, H2)
    w2 = s2[:, None] * w2_t
    b2 = jnp.dot(t2, w2_t, precision=prec)

    # Final layer: h @ Wf.T + bf (no padding; out_sz lanes stored directly).
    wf = params["wf"].T                           # (H2, out_sz)
    bf = params["bf"]

    return dict(
        w1=w1.astype(compute_dtype), b1=b1.reshape(1, -1).astype(jnp.float32),
        w2=w2.astype(compute_dtype), b2=b2.reshape(1, -1).astype(jnp.float32),
        wf=wf.astype(compute_dtype), bf=bf.reshape(1, -1).astype(jnp.float32),
    )


def reference_forward(x_cat, x_cont, params, eps=1e-5):
    """Pure-JAX f32 reference of LT_TabularModel.forward (eval mode)."""
    prec = lax.Precision.HIGHEST
    embs = [params["emb_tables"][i][x_cat[:, i]]
            for i in range(len(params["emb_tables"]))]
    x_emb = jnp.concatenate(embs, axis=1)

    sc, tc = fold_bn(*params["bn_cont"], eps=eps)
    x_c = x_cont * sc + tc
    x = jnp.concatenate([x_emb, x_c], axis=1)

    s1, t1 = fold_bn(*params["bn1"], eps=eps)
    h = jnp.maximum(jnp.dot(x * s1 + t1, params["w1"].T, precision=prec), 0.0)

    s2, t2 = fold_bn(*params["bn2"], eps=eps)
    h = jnp.maximum(jnp.dot(h * s2 + t2, params["w2"].T, precision=prec), 0.0)

    return jnp.dot(h, params["wf"].T, precision=prec) + params["bf"]


# ------------------------------- main -------------------------------------- #
if __name__ == "__main__":
    # Small, forward-consistent shapes.
    B = 8
    emb_szs = [(10, 4), (8, 3)]          # (num_categories, embedding_dim)
    n_cont = 5
    layers_cfg = [32, 16]
    out_sz = 2
    n_emb = sum(nf for _, nf in emb_szs)
    d_in = n_emb + n_cont                # 12

    key = jax.random.PRNGKey(0)
    keys = jax.random.split(key, 20)
    k = iter(keys)

    # ---- deterministic parameter initialization (synthetic, no checkpoint) ----
    emb_tables = [jax.random.normal(next(k), (ni, nf), jnp.float32) * 0.1
                  for ni, nf in emb_szs]

    def make_bn(key_, n):
        kg, kb, km, kv = jax.random.split(key_, 4)
        gamma = 1.0 + 0.1 * jax.random.normal(kg, (n,), jnp.float32)
        beta = 0.1 * jax.random.normal(kb, (n,), jnp.float32)
        rmean = 0.1 * jax.random.normal(km, (n,), jnp.float32)
        rvar = jax.random.uniform(kv, (n,), jnp.float32, 0.5, 1.5)
        return (gamma, beta, rmean, rvar)

    bn_cont = make_bn(next(k), n_cont)
    bn1 = make_bn(next(k), d_in)
    bn2 = make_bn(next(k), layers_cfg[0])

    # Linear weights stored PyTorch-style as (out, in); bias only on final layer.
    w1 = jax.random.normal(next(k), (layers_cfg[0], d_in), jnp.float32) * 0.2
    w2 = jax.random.normal(next(k), (layers_cfg[1], layers_cfg[0]), jnp.float32) * 0.2
    wf = jax.random.normal(next(k), (out_sz, layers_cfg[1]), jnp.float32) * 0.2
    bf = 0.1 * jax.random.normal(next(k), (out_sz,), jnp.float32)

    params = dict(emb_tables=emb_tables, bn_cont=bn_cont, bn1=bn1, bn2=bn2,
                  w1=w1, w2=w2, wf=wf, bf=bf)

    # ---- inputs ----
    x_cat = jnp.stack(
        [jax.random.randint(next(k), (B,), 0, ni, jnp.int32) for ni, _ in emb_szs],
        axis=1)                                               # (B, 2) int32
    x_cont = jax.random.normal(next(k), (B, n_cont), jnp.float32)

    # ---- glue (JAX): embedding gather + concat with raw x_cont ----
    # TODO(synk): embedding gather over mixed-width tables stays in XLA
    # (a per-row DMA-gather Pallas kernel is possible but not worth it here).
    x_emb = jnp.concatenate(
        [emb_tables[i][x_cat[:, i]] for i in range(len(emb_tables))], axis=1)
    x_in = jnp.concatenate([x_emb, x_cont], axis=1)           # (B, d_in)

    # ---- bf16 path (default for v6e/v7x): loose tolerance vs f32 reference ----
    folded_bf16 = fold_model_params(params, compute_dtype=jnp.bfloat16)
    out = run_tabular_mlp(x_in, folded_bf16, block_b=8192)
    out = jax.block_until_ready(out)

    ref = reference_forward(x_cat, x_cont, params)
    assert out.shape == (B, out_sz)
    assert jnp.allclose(out, ref, atol=5e-2, rtol=5e-2), (out, ref)

    # ---- f32-weight path (tighter check of the fold/kernel structure) ----
    folded_f32 = fold_model_params(params, compute_dtype=jnp.float32)
    out_f32 = jax.block_until_ready(run_tabular_mlp(x_in, folded_f32))
    assert jnp.allclose(out_f32, ref, atol=5e-2, rtol=5e-2), (out_f32, ref)

    print("KERNEL_OK")
</pallas_src>

<mosaic_0001>
module attributes {stable_mosaic.version = 11 : i64} {
  func.func @tabular_mlp_kernel(%arg0: i32, %arg1: memref<8x12xbf16, #tpu.memory_space<vmem>>, %arg2: memref<12x32xbf16, #tpu.memory_space<vmem>>, %arg3: memref<1x32xf32, #tpu.memory_space<vmem>>, %arg4: memref<32x16xbf16, #tpu.memory_space<vmem>>, %arg5: memref<1x16xf32, #tpu.memory_space<vmem>>, %arg6: memref<16x2xbf16, #tpu.memory_space<vmem>>, %arg7: memref<1x2xf32, #tpu.memory_space<vmem>>, %arg8: memref<8x2xf32, #tpu.memory_space<vmem>>) attributes {dimension_semantics = [#tpu.dimension_semantics<parallel>], iteration_bounds = array<i64: 1>, scalar_prefetch = 0 : i64, scratch_operands = 0 : i64, tpu.core_type = #tpu.core_type<tc>, window_params = [{transform_indices = @transform_0, window_bounds = array<i64: 8, 12>}, {pipeline_mode = #tpu.pipeline_mode<synchronous>, transform_indices = @transform_1, window_bounds = array<i64: 12, 32>}, {pipeline_mode = #tpu.pipeline_mode<synchronous>, transform_indices = @transform_2, window_bounds = array<i64: 1, 32>}, {pipeline_mode = #tpu.pipeline_mode<synchronous>, transform_indices = @transform_3, window_bounds = array<i64: 32, 16>}, {pipeline_mode = #tpu.pipeline_mode<synchronous>, transform_indices = @transform_4, window_bounds = array<i64: 1, 16>}, {pipeline_mode = #tpu.pipeline_mode<synchronous>, transform_indices = @transform_5, window_bounds = array<i64: 16, 2>}, {pipeline_mode = #tpu.pipeline_mode<synchronous>, transform_indices = @transform_6, window_bounds = array<i64: 1, 2>}, {transform_indices = @transform_7, window_bounds = array<i64: 8, 2>}]} {
    %c0 = arith.constant 0 : index
    %c0_0 = arith.constant 0 : index
    %0 = vector.load %arg1[%c0, %c0_0] : memref<8x12xbf16, #tpu.memory_space<vmem>>, vector<8x12xbf16>
    %c0_1 = arith.constant 0 : index
    %c0_2 = arith.constant 0 : index
    %1 = vector.load %arg2[%c0_1, %c0_2] : memref<12x32xbf16, #tpu.memory_space<vmem>>, vector<12x32xbf16>
    %cst = arith.constant dense<0.000000e+00> : vector<8x32xf32>
    %2 = tpu.matmul %0, %1, %cst {dimension_numbers = #tpu.dot_dimension_numbers<[1], [0], [0], [1], [0, 0, 1, 1], [], []>} : vector<8x12xbf16>, vector<12x32xbf16>, vector<8x32xf32> -> vector<8x32xf32>
    %c0_3 = arith.constant 0 : index
    %c0_4 = arith.constant 0 : index
    %3 = vector.load %arg3[%c0_3, %c0_4] : memref<1x32xf32, #tpu.memory_space<vmem>>, vector<1x32xf32>
    %4 = vector.broadcast %3 : vector<1x32xf32> to vector<8x32xf32>
    %5 = arith.addf %2, %4 : vector<8x32xf32>
    %cst_5 = arith.constant 0.000000e+00 : f32
    %6 = vector.broadcast %cst_5 : f32 to vector<8x32xf32>
    %7 = arith.maximumf %5, %6 : vector<8x32xf32>
    %8 = arith.truncf %7 : vector<8x32xf32> to vector<8x32xbf16>
    %c0_6 = arith.constant 0 : index
    %c0_7 = arith.constant 0 : index
    %9 = vector.load %arg4[%c0_6, %c0_7] : memref<32x16xbf16, #tpu.memory_space<vmem>>, vector<32x16xbf16>
    %cst_8 = arith.constant dense<0.000000e+00> : vector<8x16xf32>
    %10 = tpu.matmul %8, %9, %cst_8 {dimension_numbers = #tpu.dot_dimension_numbers<[1], [0], [0], [1], [0, 0, 1, 1], [], []>} : vector<8x32xbf16>, vector<32x16xbf16>, vector<8x16xf32> -> vector<8x16xf32>
    %c0_9 = arith.constant 0 : index
    %c0_10 = arith.constant 0 : index
    %11 = vector.load %arg5[%c0_9, %c0_10] : memref<1x16xf32, #tpu.memory_space<vmem>>, vector<1x16xf32>
    %12 = vector.broadcast %11 : vector<1x16xf32> to vector<8x16xf32>
    %13 = arith.addf %10, %12 : vector<8x16xf32>
    %cst_11 = arith.constant 0.000000e+00 : f32
    %14 = vector.broadcast %cst_11 : f32 to vector<8x16xf32>
    %15 = arith.maximumf %13, %14 : vector<8x16xf32>
    %16 = arith.truncf %15 : vector<8x16xf32> to vector<8x16xbf16>
    %c0_12 = arith.constant 0 : index
    %c0_13 = arith.constant 0 : index
    %17 = vector.load %arg6[%c0_12, %c0_13] : memref<16x2xbf16, #tpu.memory_space<vmem>>, vector<16x2xbf16>
    %cst_14 = arith.constant dense<0.000000e+00> : vector<8x2xf32>
    %18 = tpu.matmul %16, %17, %cst_14 {dimension_numbers = #tpu.dot_dimension_numbers<[1], [0], [0], [1], [0, 0, 1, 1], [], []>} : vector<8x16xbf16>, vector<16x2xbf16>, vector<8x2xf32> -> vector<8x2xf32>
    %c0_15 = arith.constant 0 : index
    %c0_16 = arith.constant 0 : index
    %19 = vector.load %arg7[%c0_15, %c0_16] : memref<1x2xf32, #tpu.memory_space<vmem>>, vector<1x2xf32>
    %20 = vector.broadcast %19 : vector<1x2xf32> to vector<8x2xf32>
    %21 = arith.addf %18, %20 : vector<8x2xf32>
    %c0_17 = arith.constant 0 : index
    %c0_18 = arith.constant 0 : index
    %22 = vector.load %arg8[%c0_17, %c0_18] : memref<8x2xf32, #tpu.memory_space<vmem>>, vector<8x2xf32>
    tpu.vector_store %arg8[%c0_17, %c0_18], %21 {strides = array<i32>} : memref<8x2xf32, #tpu.memory_space<vmem>>, vector<8x2xf32>,
    return
  }
  func.func @transform_0(%arg0: i32) -> (i32, i32) {
    %c0_i32 = arith.constant 0 : i32
    %c0_i32_0 = arith.constant 0 : i32
    return %arg0, %c0_i32 : i32, i32
  }
  func.func @transform_1(%arg0: i32) -> (i32, i32) {
    %c0_i32 = arith.constant 0 : i32
    %c0_i32_0 = arith.constant 0 : i32
    %c0_i32_1 = arith.constant 0 : i32
    return %c0_i32, %c0_i32_0 : i32, i32
  }
  func.func @transform_2(%arg0: i32) -> (i32, i32) {
    %c0_i32 = arith.constant 0 : i32
    %c0_i32_0 = arith.constant 0 : i32
    %c0_i32_1 = arith.constant 0 : i32
    return %c0_i32, %c0_i32_0 : i32, i32
  }
  func.func @transform_3(%arg0: i32) -> (i32, i32) {
    %c0_i32 = arith.constant 0 : i32
    %c0_i32_0 = arith.constant 0 : i32
    %c0_i32_1 = arith.constant 0 : i32
    return %c0_i32, %c0_i32_0 : i32, i32
  }
  func.func @transform_4(%arg0: i32) -> (i32, i32) {
    %c0_i32 = arith.constant 0 : i32
    %c0_i32_0 = arith.constant 0 : i32
    %c0_i32_1 = arith.constant 0 : i32
    return %c0_i32, %c0_i32_0 : i32, i32
  }
  func.func @transform_5(%arg0: i32) -> (i32, i32) {
    %c0_i32 = arith.constant 0 : i32
    %c0_i32_0 = arith.constant 0 : i32
    %c0_i32_1 = arith.constant 0 : i32
    return %c0_i32, %c0_i32_0 : i32, i32
  }
  func.func @transform_6(%arg0: i32) -> (i32, i32) {
    %c0_i32 = arith.constant 0 : i32
    %c0_i32_0 = arith.constant 0 : i32
    %c0_i32_1 = arith.constant 0 : i32
    return %c0_i32, %c0_i32_0 : i32, i32
  }
  func.func @transform_7(%arg0: i32) -> (i32, i32) {
    %c0_i32 = arith.constant 0 : i32
    %c0_i32_0 = arith.constant 0 : i32
    return %arg0, %c0_i32 : i32, i32
  }
}

</mosaic_0001>

<bundles_post_ra>
// kernel: tpu_custom_call.1
= control target key start
LH: loop header
LB: loop body
LE: loop exit
PB: predicated region body
PF: predicated region fallthrough
CT: control target
= control target key end

     0   :  { %vm43_vm0 = vcmask 1045504   ;;  %vm39_vm1 = vcmask 97280   ;;  %vm82_vm2 = vcmask 261120   ;;  %vm113_vm3 = vcmask 130048   ;;  %s232_s1 = inlined_call_operand.vmem [shape: bf16[12,32], index: 1, kind: input, shape index: {}]   ;;  %s233_s2 = inlined_call_operand.vmem [shape: f32[1,32], index: 2, kind: input, shape index: {}]   ;;  %s234_s0 = inlined_call_operand.vmem [shape: bf16[8,12], index: 0, kind: input, shape index: {}]   ;;  %s235_s4 = inlined_call_operand.vmem [shape: f32[1,16], index: 4, kind: input, shape index: {}]   ;;  %s236_s3 = inlined_call_operand.vmem [shape: bf16[32,16], index: 3, kind: input, shape index: {}]   ;;  %s237_s6 = inlined_call_operand.vmem [shape: f32[1,2], index: 6, kind: input, shape index: {}]   ;;  %s238_s5 = inlined_call_operand.vmem [shape: bf16[16,2], index: 5, kind: input, shape index: {}]   ;;  %s239_s7 = inlined_call_operand.vmem [shape: f32[8,2], index: 7, kind: output, shape index: {}]  }
   0x1   :  { %v138_v0 = vld [vmem:[%s232_s1] sm:$0xf]  ;;  %v155_v1 = vld [vmem:[%s232_s1] sm:$0x30]  ;;  %v157_v5 = vld [vmem:[%s236_s3 + $0x8] sm:$0xff]  ;;  %vm130_vm4 = vcmask 15360  }
   0x2   :  { %v139_v2 = vor.u32 %v155_v1, %v138_v0  ;;  %v27_v4 = vld [vmem:[%s234_s0] sm:$0xf]  ;;  %92 = vmatpush.bf16.msra.mxu1 %v157_v5 }
   0x3   :  { %v156_v6 = vld [vmem:[%s236_s3] sm:$0xff] }
   0x4   :  { %v45_v3 = vsel %vm43_vm0, %v139_v2, 0  ;;  %v159_v7 = vld [vmem:[%s233_s2] ss:$0 sm:$0xff] }
   0x5   :  { %54 = vmatpush.bf16.msra.mxu0 %v45_v3  ;;  %v158_v13 = vld [vmem:[%s238_s5] sm:$0xff] }
   0x6   :  { %93 = vmatpush.bf16.msra.mxu1 %v156_v6  ;;  %124 = vmatpush.bf16.msra.mxu2 %v158_v13  ;;  %v160_v14 = vld [vmem:[%s235_s4] ss:$0 sm:$0xff] }
   0x7   :  { %v161_v20 = vld [vmem:[%s237_s6] ss:$0 sm:$0xff] }
   0x8   :  { %140 = vmatmul.msk.bf16.vlgmr.msra.gmra.mxu0 %vm39_vm1, %v27_v4 }
  0x85   :  { %v56_v8 = vpop.f32.mrf.mxu0 }
  0x86   :  { %v57_v9 = vadd.f32 %v159_v7, %v56_v8 }
  0x88   :  { %v60_v10 = vmax.f32 %v57_v9, 0.0 }
  0x8a   :  { %v61_v11 = vpack.c.bf16 %v60_v10, %v60_v10 }
  0x8c   :  { %149 = vmatmul.msk.bf16.vlgmr.msra.gmra.mxu1 %vm82_vm2, %v61_v11 }
  0x8d   :  { %v58_v12 = vpop.f32.mrf.mxu0 }
 0x109   :  { %v95_v15 = vpop.f32.mrf.mxu1 }
 0x10a   :  { %v96_v16 = vadd.f32 %v160_v14, %v95_v15 }
 0x10c   :  { %v99_v17 = vmax.f32 %v96_v16, 0.0 }
 0x10e   :  { %v100_v18 = vpack.c.bf16 %v99_v17, %v99_v17 }
 0x110   :  { %154 = vmatmul.msk.bf16.vlgmr.msra.gmra.mxu2 %vm113_vm3, %v100_v18 }
 0x111   :  { %v97_v19 = vpop.f32.mrf.mxu1 }
 0x193   :  { %v126_v21 = vpop.f32.mrf.mxu2 }
 0x194   :  { %v127_v22 = vadd.f32 %v161_v20, %v126_v21 }
 0x196   :  { %131 = vst.msk [vmem:[%s239_s7] sm:$0xff] %vm130_vm4, %v127_v22 }
 0x19b   :  { %v128_v23 = vpop.f32.mrf.mxu2 }

</bundles_post_ra>
